<compile_context>
chip_gen: v6e
topology: v6e:2x2x1
jax: 0.10.0
libtpu: 0.0.40
codegen_flags: <defaults>
</compile_context>

<pallas_src>
import functools

import jax
import jax.numpy as jnp
from jax.experimental import pallas as pl
from jax.experimental.pallas import tpu as pltpu


# ----------------------------------------------------------------------------
# Small helpers.
# ----------------------------------------------------------------------------
def _round_up(x, m):
    return ((x + m - 1) // m) * m


def _pad2d(x, rows, cols):
    r, c = x.shape
    if r == rows and c == cols:
        return x
    return jnp.pad(x, ((0, rows - r), (0, cols - c)))


# ----------------------------------------------------------------------------
# Pallas kernel: tiled matmul with fused bias + optional ReLU epilogue.
#   grid = (M/TM, N/TN, K/TK)  -- reduction axis last.
#   acc_ref: persistent f32 VMEM accumulator (init @ k==0, store @ k==last).
# ----------------------------------------------------------------------------
def mm_bias_act_kernel(a_ref, b_ref, bias_ref, o_ref, acc_ref, *, apply_relu):
    k = pl.program_id(2)

    @pl.when(k == 0)
    def _init():
        acc_ref[...] = jnp.zeros_like(acc_ref)

    # bf16 x bf16 -> f32 accumulate on the MXU.
    acc_ref[...] += jnp.dot(a_ref[...], b_ref[...],
                            preferred_element_type=jnp.float32)

    @pl.when(k == pl.num_programs(2) - 1)
    def _finalize():
        out = acc_ref[...] + bias_ref[...]          # bias broadcast over rows
        if apply_relu:
            out = jnp.maximum(out, 0.0)             # fused ReLU (VPU)
        o_ref[...] = out.astype(o_ref.dtype)        # single lane-dense store


def matmul_bias_act(a, b, bias, *, apply_relu,
                    tm=256, tn=256, tk=512):
    """out = a @ b + bias (optional ReLU). bf16 inputs, f32 accumulation.

    a: (M, K), b: (K, N), bias: (1, N). Returns f32 (M, N).
    Operands are zero-padded to tile multiples (M -> 16, N/K -> 128 aligned).
    """
    M, K = a.shape
    K2, N = b.shape
    assert K == K2, (a.shape, b.shape)

    # Tile sizes: sublane-aligned M (16 for bf16 packing), lane-aligned N/K.
    TM = min(tm, _round_up(M, 16))
    TN = min(tn, _round_up(N, 128))
    TK = min(tk, _round_up(K, 128))
    Mp, Np, Kp = _round_up(M, TM), _round_up(N, TN), _round_up(K, TK)

    # Zero padding is exact for the matmul; cast to bf16 at the call boundary.
    a_p = _pad2d(a, Mp, Kp).astype(jnp.bfloat16)
    b_p = _pad2d(b, Kp, Np).astype(jnp.bfloat16)
    bias_p = _pad2d(bias, 1, Np).astype(jnp.float32)

    kernel = functools.partial(mm_bias_act_kernel, apply_relu=apply_relu)
    out = pl.pallas_call(
        kernel,
        out_shape=jax.ShapeDtypeStruct((Mp, Np), jnp.float32),
        grid_spec=pltpu.PrefetchScalarGridSpec(
            num_scalar_prefetch=0,
            grid=(Mp // TM, Np // TN, Kp // TK),
            in_specs=[
                pl.BlockSpec((TM, TK), lambda i, j, k: (i, k)),
                pl.BlockSpec((TK, TN), lambda i, j, k: (k, j)),
                pl.BlockSpec((1, TN), lambda i, j, k: (0, j)),
            ],
            out_specs=pl.BlockSpec((TM, TN), lambda i, j, k: (i, j)),
            scratch_shapes=[pltpu.VMEM((TM, TN), jnp.float32)],
        ),
        compiler_params=pltpu.CompilerParams(
            dimension_semantics=("parallel", "parallel", "arbitrary"),
            vmem_limit_bytes=32 * 1024 * 1024,
        ),
    )(a_p, b_p, bias_p)
    return out[:M, :N]


# ----------------------------------------------------------------------------
# One GCNConv layer = two tiled Pallas matmuls, fusion order chosen per layer.
# ----------------------------------------------------------------------------
def gcn_conv_pallas(a_hat, x, w, b, *, apply_relu):
    f_in, f_out = w.shape
    zero_bias_in = jnp.zeros((1, f_in), jnp.float32)
    zero_bias_out = jnp.zeros((1, f_out), jnp.float32)
    if f_out <= f_in:
        # transform-first: A_hat @ (X @ W) + b
        xw = matmul_bias_act(x, w, zero_bias_out, apply_relu=False)
        out = matmul_bias_act(a_hat, xw, b, apply_relu=apply_relu)
    else:
        # aggregate-first: (A_hat @ X) @ W + b
        ax = matmul_bias_act(a_hat, x, zero_bias_in, apply_relu=False)
        out = matmul_bias_act(ax, w, b, apply_relu=apply_relu)
    return out


# ----------------------------------------------------------------------------
# Glue: dense normalized adjacency for a sampled bipartite layer.
# ----------------------------------------------------------------------------
def build_norm_adj(edge_index, n_src, n_tgt):
    """A_hat = D_t^{-1/2} (A + I_tgt) D_s^{-1/2}, shape (n_tgt, n_src).

    edge_index: int32 (2, E); row 0 = source node ids (< n_src),
                               row 1 = target node ids (< n_tgt).
    Target node i corresponds to source node i (NeighborSampler convention),
    so self-loops are added on the diagonal of the first n_tgt columns.
    """
    # TODO(synk): for large sampled subgraphs replace this dense adjacency with
    # a sparse gather formulation (scalar-prefetched neighbor tables).
    src = edge_index[0]
    tgt = edge_index[1]
    a = jnp.zeros((n_tgt, n_src), jnp.float32).at[tgt, src].add(1.0)
    diag = jnp.arange(n_tgt)
    a = a.at[diag, diag].add(1.0)                      # self loops on targets
    deg_tgt = jnp.sum(a, axis=1)                       # in-degree (incl. self)
    deg_src = jnp.concatenate(
        [deg_tgt, jnp.ones((n_src - n_tgt,), jnp.float32)])
    d_t = jnp.where(deg_tgt > 0, 1.0 / jnp.sqrt(deg_tgt), 0.0)
    d_s = jnp.where(deg_src > 0, 1.0 / jnp.sqrt(deg_src), 0.0)
    return a * d_t[:, None] * d_s[None, :]


# ----------------------------------------------------------------------------
# GCN module (parameters + forward).
# ----------------------------------------------------------------------------
def glorot(key, fan_in, fan_out):
    limit = jnp.sqrt(6.0 / (fan_in + fan_out))
    return jax.random.uniform(key, (fan_in, fan_out), jnp.float32,
                              minval=-limit, maxval=limit)


def init_gcn_params(key, in_channels, hidden_channels, out_channels,
                    num_layers):
    dims = ([in_channels] + [hidden_channels] * (num_layers - 1)
            + [out_channels])
    params = []
    for i in range(num_layers):
        key, sub = jax.random.split(key)
        w = glorot(sub, dims[i], dims[i + 1])
        b = jnp.zeros((1, dims[i + 1]), jnp.float32)
        params.append((w, b))
    return params


def gcn_forward(params, x, adjs, dropout_p=0.5, training=False):
    """adjs: list of (edge_index, size=(n_src, n_tgt)), one per layer."""
    # F.dropout with training=False is identity (eval-mode forward).
    # TODO(synk): training-mode dropout could use pltpu.prng_random_bits.
    del dropout_p, training
    num_layers = len(params)
    for i, (edge_index, size) in enumerate(adjs):
        n_src, n_tgt = size
        a_hat = build_norm_adj(edge_index, n_src, n_tgt)
        w, b = params[i]
        is_last = (i == num_layers - 1)
        x = gcn_conv_pallas(a_hat, x, w, b, apply_relu=not is_last)
    return x


# ----------------------------------------------------------------------------
# Demo.
# ----------------------------------------------------------------------------
if __name__ == "__main__":
    key = jax.random.PRNGKey(0)

    in_channels, hidden_channels, out_channels = 16, 32, 8
    num_layers = 3
    # Sampled node counts per hop (outermost -> innermost), like NeighborSampler.
    node_counts = [64, 48, 32, 16]

    k_param, k_x, k_edges = jax.random.split(key, 3)
    params = init_gcn_params(k_param, in_channels, hidden_channels,
                             out_channels, num_layers)

    x = jax.random.normal(k_x, (node_counts[0], in_channels), jnp.float32)

    adjs = []
    for i in range(num_layers):
        n_src, n_tgt = node_counts[i], node_counts[i + 1]
        k_edges, ks, kt = jax.random.split(k_edges, 3)
        num_edges = 4 * n_tgt
        src = jax.random.randint(ks, (num_edges,), 0, n_src, jnp.int32)
        tgt = jax.random.randint(kt, (num_edges,), 0, n_tgt, jnp.int32)
        edge_index = jnp.stack([src, tgt], axis=0)
        adjs.append((edge_index, (n_src, n_tgt)))

    out = gcn_forward(params, x, adjs, dropout_p=0.5, training=False)
    out = jax.block_until_ready(out)

    assert out.shape == (node_counts[-1], out_channels), out.shape
    assert bool(jnp.all(jnp.isfinite(out)))
    print("KERNEL_OK")
</pallas_src>

<mosaic_0001>
module attributes {stable_mosaic.version = 11 : i64} {
  func.func @mm_bias_act_kernel(%arg0: i32, %arg1: i32, %arg2: i32, %arg3: memref<48x128xbf16, #tpu.memory_space<vmem>>, %arg4: memref<128x128xbf16, #tpu.memory_space<vmem>>, %arg5: memref<1x128xf32, #tpu.memory_space<vmem>>, %arg6: memref<48x128xf32, #tpu.memory_space<vmem>>, %arg7: memref<48x128xf32, #tpu.memory_space<vmem>>) attributes {dimension_semantics = [#tpu.dimension_semantics<parallel>, #tpu.dimension_semantics<parallel>, #tpu.dimension_semantics<arbitrary>], iteration_bounds = array<i64: 1, 1, 1>, scalar_prefetch = 0 : i64, scratch_operands = 1 : i64, tpu.core_type = #tpu.core_type<tc>, window_params = [{transform_indices = @transform_0, window_bounds = array<i64: 48, 128>}, {transform_indices = @transform_1, window_bounds = array<i64: 128, 128>}, {transform_indices = @transform_2, window_bounds = array<i64: 1, 128>}, {transform_indices = @transform_3, window_bounds = array<i64: 48, 128>}]} {
    %c0_i32 = arith.constant 0 : i32
    %0 = arith.cmpi eq, %arg2, %c0_i32 : i32
    %1 = arith.extui %0 : i1 to i32
    %c0_i32_0 = arith.constant 0 : i32
    %2 = arith.cmpi ne, %1, %c0_i32_0 : i32
    scf.if %2 {
      %cst_10 = arith.constant 0.000000e+00 : f32
      %12 = vector.broadcast %cst_10 : f32 to vector<48x128xf32>
      %c0_11 = arith.constant 0 : index
      %c0_12 = arith.constant 0 : index
      %13 = vector.load %arg7[%c0_11, %c0_12] : memref<48x128xf32, #tpu.memory_space<vmem>>, vector<48x128xf32>
      tpu.vector_store %arg7[%c0_11, %c0_12], %12 {strides = array<i32>} : memref<48x128xf32, #tpu.memory_space<vmem>>, vector<48x128xf32>,
    } else {
    }
    %c0 = arith.constant 0 : index
    %c0_1 = arith.constant 0 : index
    %3 = vector.load %arg7[%c0, %c0_1] : memref<48x128xf32, #tpu.memory_space<vmem>>, vector<48x128xf32>
    %c0_2 = arith.constant 0 : index
    %c0_3 = arith.constant 0 : index
    %4 = vector.load %arg3[%c0_2, %c0_3] : memref<48x128xbf16, #tpu.memory_space<vmem>>, vector<48x128xbf16>
    %c0_4 = arith.constant 0 : index
    %c0_5 = arith.constant 0 : index
    %5 = vector.load %arg4[%c0_4, %c0_5] : memref<128x128xbf16, #tpu.memory_space<vmem>>, vector<128x128xbf16>
    %cst = arith.constant dense<0.000000e+00> : vector<48x128xf32>
    %6 = tpu.matmul %4, %5, %cst {dimension_numbers = #tpu.dot_dimension_numbers<[1], [0], [0], [1], [0, 0, 1, 1], [], []>} : vector<48x128xbf16>, vector<128x128xbf16>, vector<48x128xf32> -> vector<48x128xf32>
    %7 = arith.addf %3, %6 : vector<48x128xf32>
    %c0_6 = arith.constant 0 : index
    %c0_7 = arith.constant 0 : index
    %8 = vector.load %arg7[%c0_6, %c0_7] : memref<48x128xf32, #tpu.memory_space<vmem>>, vector<48x128xf32>
    tpu.vector_store %arg7[%c0_6, %c0_7], %7 {strides = array<i32>} : memref<48x128xf32, #tpu.memory_space<vmem>>, vector<48x128xf32>,
    %c0_i32_8 = arith.constant 0 : i32
    %9 = arith.cmpi eq, %arg2, %c0_i32_8 : i32
    %10 = arith.extui %9 : i1 to i32
    %c0_i32_9 = arith.constant 0 : i32
    %11 = arith.cmpi ne, %10, %c0_i32_9 : i32
    scf.if %11 {
      %c0_10 = arith.constant 0 : index
      %c0_11 = arith.constant 0 : index
      %12 = vector.load %arg7[%c0_10, %c0_11] : memref<48x128xf32, #tpu.memory_space<vmem>>, vector<48x128xf32>
      %c0_12 = arith.constant 0 : index
      %c0_13 = arith.constant 0 : index
      %13 = vector.load %arg5[%c0_12, %c0_13] : memref<1x128xf32, #tpu.memory_space<vmem>>, vector<1x128xf32>
      %14 = vector.broadcast %13 : vector<1x128xf32> to vector<48x128xf32>
      %15 = arith.addf %12, %14 : vector<48x128xf32>
      %c0_14 = arith.constant 0 : index
      %c0_15 = arith.constant 0 : index
      %16 = vector.load %arg6[%c0_14, %c0_15] : memref<48x128xf32, #tpu.memory_space<vmem>>, vector<48x128xf32>
      tpu.vector_store %arg6[%c0_14, %c0_15], %15 {strides = array<i32>} : memref<48x128xf32, #tpu.memory_space<vmem>>, vector<48x128xf32>,
    } else {
    }
    return
  }
  func.func @transform_0(%arg0: i32, %arg1: i32, %arg2: i32) -> (i32, i32) {
    %c0_i32 = arith.constant 0 : i32
    return %arg0, %arg2 : i32, i32
  }
  func.func @transform_1(%arg0: i32, %arg1: i32, %arg2: i32) -> (i32, i32) {
    %c0_i32 = arith.constant 0 : i32
    return %arg2, %arg1 : i32, i32
  }
  func.func @transform_2(%arg0: i32, %arg1: i32, %arg2: i32) -> (i32, i32) {
    %c0_i32 = arith.constant 0 : i32
    %c0_i32_0 = arith.constant 0 : i32
    return %c0_i32, %arg1 : i32, i32
  }
  func.func @transform_3(%arg0: i32, %arg1: i32, %arg2: i32) -> (i32, i32) {
    %c0_i32 = arith.constant 0 : i32
    return %arg0, %arg1 : i32, i32
  }
}

</mosaic_0001>

<bundles_post_ra>
// kernel: tpu_custom_call.1
= control target key start
LH: loop header
LB: loop body
LE: loop exit
PB: predicated region body
PF: predicated region fallthrough
CT: control target
= control target key end

     0   :  { %8 = vsyncpa [#allocation4], 0  ;;  %s460_s0 = inlined_call_operand.hbm [shape: bf16[48,128], index: 0, kind: input, shape index: {}]   ;;  %s461_s1 = inlined_call_operand.hbm [shape: bf16[128,128], index: 1, kind: input, shape index: {}]   ;;  %s462_s2 = inlined_call_operand.vmem [shape: f32[1,128], index: 2, kind: input, shape index: {}]   ;;  %s463_s3 = inlined_call_operand.hbm [shape: f32[48,128], index: 3, kind: output, shape index: {}]  }
   0x1   :  { %9 = vsyncpa [#allocation7], 0 }
   0x2   :  { %10 = vsyncpa [#allocation5], 0  ;;  %s416_s12 = smov [#allocation3]  }
   0x3   :  { %s16_s13 = sshll.u32 %s416_s12, 4  ;;  %s17_s13 = int_to_ptr.vmem [resolvable:$true] %s16_s13 }
   0x4   :  { %s358_s14 = scalar_lea.vmem %s17_s13, 384  ;;  %p363_p1 = scmp.lt.s32.totalorder %s17_s13, %s17_s13 }
   0x5   :  { %p359_p0 = scmp.ne.s32.totalorder %s17_s13, %s358_s14  ;;  %p364_p2 = scmp.lt.s32.totalorder %s358_s14, %s358_s14 }
   0x7   :  { %p365_p3 = por %p364_p2, %p363_p1 }
   0x9   :  { %p366_p4 = pnand %p365_p3, %p359_p0 }
   0xb   :  { %369 = shalt.err (!%p366_p4)
}
   0xc   :  { %s417_s15 = smov 64   ;;  %s418_s16 = smov 4  }
   0xd   :  { %22 = dma.hbm_to_vmem [thread:$0]  %s460_s0, 384, %s17_s13, [#allocation4], %s417_s15, %s417_s15, %s418_s16  }
   0xe   :  { %s419_s19 = smov [#allocation6]  }
   0xf   :  { %s28_s20 = sshll.u32 %s419_s19, 4  ;;  %s29_s20 = int_to_ptr.vmem [resolvable:$true] %s28_s20 }
  0x10   :  { %s378_s21 = scalar_lea.vmem %s29_s20, 1024  ;;  %p383_p6 = scmp.lt.s32.totalorder %s29_s20, %s29_s20 }
  0x11   :  { %p379_p5 = scmp.ne.s32.totalorder %s29_s20, %s378_s21  ;;  %p384_p7 = scmp.lt.s32.totalorder %s378_s21, %s378_s21 }
  0x13   :  { %p385_p8 = por %p384_p7, %p383_p6 }
  0x15   :  { %p386_p9 = pnand %p385_p8, %p379_p5 }
  0x17   :  { %389 = shalt.err (!%p386_p9)
}
  0x18   :  { %34 = dma.hbm_to_vmem [thread:$0]  %s461_s1, 1024, %s29_s20, [#allocation7], %s417_s15, %s417_s15, %s418_s16  }
  0x19   :  { %410 = dma.done.wait [#allocation4], 384  }
  0x1a   :  { %411 = vsyncadd [#allocation4], 4294966912 }
  0x1b   :  { %412 = dma.done.wait [#allocation7], 1024  }
  0x1c   :  { %413 = vsyncadd [#allocation7], 4294966272  ;;  %v420_v0 = vmov 0.0   ;;  %vm421_vm0 = vmmov 0   ;;  %v339_v1 = vld [vmem:[#allocation6 + $0x38] sm:$0xff]   ;;  %v340_v2 = vld [vmem:[#allocation6 + $0x30] sm:$0xff]  }
  0x1d   :  { %314 = vmatprep.subr.bf16.mxu1 %v420_v0  ;;  %286 = vmatprep.subr.bf16.mxu0 %v420_v0  ;;  %v341_v3 = vld [vmem:[#allocation6 + $0x28] sm:$0xff]   ;;  %v342_v4 = vld [vmem:[#allocation6 + $0x20] sm:$0xff]   ;;  %v343_v5 = vld [vmem:[#allocation6 + $0x18] sm:$0xff]   ;;  %s422_s24 = smov [#allocation8]  }
  0x1e   :  { %306 = vmatprep.mubr.msk.bf16.mxu1 %vm421_vm0, %v420_v0  ;;  %302 = vmatprep.mubr.msk.bf16.mxu0 %vm421_vm0, %v420_v0  ;;  %v344_v6 = vld [vmem:[#allocation6 + $0x10] sm:$0xff]   ;;  %v345_v7 = vld [vmem:[#allocation6 + $0x8] sm:$0xff]   ;;  %v346_v8 = vld [vmem:[#allocation6] sm:$0xff]  }
  0x1f   :  { %322 = vmatpush3.bf16.msra.mxu1 %v339_v1  ;;  %287 = vmatpush3.bf16.msra.mxu0 %v339_v1  ;;  %v347_v9 = vld [vmem:[#allocation3 + $0x8] sm:$0xff]   ;;  %v348_v10 = vld [vmem:[#allocation3] sm:$0xff]   ;;  %v349_v11 = vld [vmem:[#allocation3 + $0x10] sm:$0xff]  }
  0x20   :  { %315 = vmatprep.subr.bf16.mxu1 %v420_v0  ;;  %288 = vmatprep.subr.bf16.mxu0 %v420_v0  ;;  %v274_v12 = vld [vmem:[%s462_s2] ss:$0 sm:$0xff]  ;;  %s250_s2 = sshll.u32 %s422_s24, 4  ;;  %s251_s2 = int_to_ptr.vmem [resolvable:$true] %s250_s2 }
  0x21   :  { %s390_s25 = scalar_lea.vmem %s251_s2, 768  ;;  %p395_p11 = scmp.lt.s32.totalorder %s251_s2, %s251_s2 }
  0x22   :  { %p391_p10 = scmp.ne.s32.totalorder %s251_s2, %s390_s25  ;;  %p396_p12 = scmp.lt.s32.totalorder %s390_s25, %s390_s25 }
  0x23   :  { %323 = vmatpush3.bf16.msra.mxu1 %v340_v2  ;;  %289 = vmatpush3.bf16.msra.mxu0 %v340_v2 }
  0x24   :  { %316 = vmatprep.subr.bf16.mxu1 %v420_v0  ;;  %290 = vmatprep.subr.bf16.mxu0 %v420_v0  ;;  %p397_p13 = por %p396_p12, %p395_p11 }
  0x26   :  { %p398_p0 = pnand %p397_p13, %p391_p10 }
  0x27   :  { %324 = vmatpush3.bf16.msra.mxu1 %v341_v3  ;;  %291 = vmatpush3.bf16.msra.mxu0 %v341_v3 }
  0x28   :  { %317 = vmatprep.subr.bf16.mxu1 %v420_v0  ;;  %292 = vmatprep.subr.bf16.mxu0 %v420_v0 }
  0x2b   :  { %325 = vmatpush3.bf16.msra.mxu1 %v342_v4  ;;  %293 = vmatpush3.bf16.msra.mxu0 %v342_v4 }
  0x2c   :  { %318 = vmatprep.subr.bf16.mxu1 %v420_v0  ;;  %294 = vmatprep.subr.bf16.mxu0 %v420_v0 }
  0x2f   :  { %326 = vmatpush3.bf16.msra.mxu1 %v343_v5  ;;  %295 = vmatpush3.bf16.msra.mxu0 %v343_v5 }
  0x30   :  { %319 = vmatprep.subr.bf16.mxu1 %v420_v0  ;;  %296 = vmatprep.subr.bf16.mxu0 %v420_v0 }
  0x33   :  { %327 = vmatpush3.bf16.msra.mxu1 %v344_v6  ;;  %297 = vmatpush3.bf16.msra.mxu0 %v344_v6 }
  0x34   :  { %320 = vmatprep.subr.bf16.mxu1 %v420_v0  ;;  %298 = vmatprep.subr.bf16.mxu0 %v420_v0 }
  0x37   :  { %328 = vmatpush3.bf16.msra.mxu1 %v345_v7  ;;  %299 = vmatpush3.bf16.msra.mxu0 %v345_v7 }
  0x38   :  { %321 = vmatprep.subr.bf16.mxu1 %v420_v0  ;;  %300 = vmatprep.subr.bf16.mxu0 %v420_v0 }
  0x3b   :  { %329 = vmatpush3.bf16.msra.mxu1 %v346_v8  ;;  %301 = vmatpush3.bf16.msra.mxu0 %v346_v8 }
  0x3e   :  { %307 = vmatmul.mubr.bf16.vlgmr.msra.gmra.mxu1 %v347_v9  ;;  %303 = vmatmul.mubr.bf16.vlgmr.msra.gmra.mxu0 %v348_v10 }
  0x3f   :  { %310 = vmatprep.mubr.msk.bf16.mxu1 %vm421_vm0, %v420_v0 }
  0x46   :  { %311 = vmatmul.mubr.bf16.gmra.mxu1 %v349_v11 }
  0xfe   :  { %v190_v13 = vpop.f32.mrf.mxu1  ;;  %v182_v14 = vpop.f32.mrf.mxu0 }
  0xff   :  { %v235_v15 = vadd.f32 %v274_v12, %v190_v13  ;;  %v233_v16 = vadd.f32 %v274_v12, %v182_v14 }
 0x100   :  { %v308_v17 = vpop.f32.mrf.mxu1  ;;  %v304_v18 = vpop.f32.mrf.mxu0 }
 0x101   :  { %241 = vst [vmem:[#allocation8 + $0x10] sm:$0xff] %v235_v15  ;;  %239 = vst [vmem:[#allocation8] sm:$0xff] %v233_v16 }
 0x102   :  { %v193_v19 = vpop.f32.mrf.mxu1  ;;  %v185_v20 = vpop.f32.mrf.mxu0 }
 0x103   :  { %v236_v21 = vadd.f32 %v274_v12, %v193_v19  ;;  %v234_v22 = vadd.f32 %v274_v12, %v185_v20 }
 0x104   :  { %v309_v23 = vpop.f32.mrf.mxu1  ;;  %v305_v24 = vpop.f32.mrf.mxu0 }
 0x105   :  { %242 = vst [vmem:[#allocation8 + $0x18] sm:$0xff] %v236_v21  ;;  %240 = vst [vmem:[#allocation8 + $0x8] sm:$0xff] %v234_v22 }
 0x106   :  { %v198_v25 = vpop.f32.mrf.mxu1 }
 0x107   :  { %v237_v26 = vadd.f32 %v274_v12, %v198_v25 }
 0x108   :  { %v312_v27 = vpop.f32.mrf.mxu1 }
 0x109   :  { %243 = vst [vmem:[#allocation8 + $0x20] sm:$0xff] %v237_v26 }
 0x10a   :  { %v201_v28 = vpop.f32.mrf.mxu1 }
 0x10b   :  { %v238_v29 = vadd.f32 %v274_v12, %v201_v28 }
 0x10c   :  { %v313_v30 = vpop.f32.mrf.mxu1 }
 0x10d   :  { %244 = vst [vmem:[#allocation8 + $0x28] sm:$0xff] %v238_v29 }
 0x10e   :  { %401 = shalt.err (!%p398_p0)
}
 0x10f   :  { %s423_s26 = smov 128   ;;  %s424_s27 = smov 8  }
 0x110   :  { %256 = dma.vmem_to_hbm [thread:$0]  %s251_s2, 768, %s463_s3, [#allocation5], %s423_s26, %s423_s26, %s424_s27  }
 0x111   :  { %414 = dma.done.wait [#allocation5], 768  }
 0x112   :  { %415 = vsyncadd [#allocation5], 4294966528 }
 0x113   :  { %260 = vsyncpa [#allocation4], 1 }
 0x114   :  { %261 = vsyncpa [#allocation7], 1 }
 0x115   :  { %262 = vsyncpa [#allocation5], 1 }

</bundles_post_ra>
